<compile_context>
chip_gen: v7x
topology: tpu7x:2x2x1
jax: 0.10.0
libtpu: 0.0.40
codegen_flags: <defaults>
</compile_context>

<pallas_src>
import functools
import numpy as np
import jax
import jax.numpy as jnp
from jax import lax
from jax.experimental import pallas as pl
from jax.experimental.pallas import tpu as pltpu


# ----------------------------- location table -----------------------------

def make_loc_table(H, W, L):
    """NeRF-style location embedding table, row index = h*W + w, (HW, 4L)."""
    def loc(p):
        vals = []
        for l in range(L):
            vals.append(np.sin(2 ** l * np.pi * p))
            vals.append(np.cos(2 ** l * np.pi * p))
        return np.array(vals, dtype=np.float32)
    table = np.zeros((H * W, 4 * L), dtype=np.float32)
    for h in range(H):
        lh = loc(2 * h / H - 1)
        for w in range(W):
            table[h * W + w] = np.concatenate([lh, loc(2 * w / W - 1)])
    return jnp.asarray(table)


# ------------------------------ fused kernel -------------------------------

def _glom_kernel(n_cycles, n_levels, hw, ed, beta, mxu_dtype,
                 scal_ref,      # SMEM (2,) f32 : w1, w4
                 patches_ref,   # (HW, C*ph*pw)        mxu dtype
                 conv_w_ref,    # (C*ph*pw, E)         mxu dtype
                 conv_b_ref,    # (1, E)               f32
                 fw_ref,        # (n_levels, 2E, E)    mxu dtype (pre-scaled by w2/w3)
                 fc_ref,        # (n_levels, HW, E)    f32 (w2*bu_const + w3*td_const)
                 gamma_ref,     # (n_levels, 1, E)     f32
                 betabn_ref,    # (n_levels, 1, E)     f32
                 out_ref,       # (n_levels, HW, E)    f32  (doubles as the state)
                 lhs_ref):      # VMEM scratch (HW, 2E) mxu dtype
    f32 = jnp.float32
    w1 = scal_ref[0]
    w4 = scal_ref[1]
    inv_hw = 1.0 / hw

    # ---- init: level 0 = strided patch conv (im2col matmul), others zero ----
    out_ref[0] = jnp.dot(patches_ref[...], conv_w_ref[...],
                         preferred_element_type=f32) + conv_b_ref[...]
    for l in range(1, n_levels):
        out_ref[l] = jnp.zeros((hw, ed), f32)

    # ---- recurrence: out_ref holds prev_embedding / embedding across cycles ----
    @pl.loop(0, n_cycles)
    def _cycle(_t):
        prev = [out_ref[l] for l in range(n_levels)]   # load whole state once/cycle
        for l in range(n_levels):
            # training-mode BatchNorm2d over the HW positions (N == 1),
            # one-pass stats, applied "in place" like the torch reference.
            xl = prev[l]
            s1 = jnp.sum(xl, axis=0, keepdims=True)
            s2 = jnp.sum(xl * xl, axis=0, keepdims=True)
            mean = s1 * inv_hw
            var = s2 * inv_hw - mean * mean
            scale = lax.rsqrt(var + 1e-5) * gamma_ref[l]
            xn = xl * scale + (betabn_ref[l] - mean * scale)
            prev[l] = xn

            # Fused bottom-up + top-down: ONE K=2E MXU matmul. The missing
            # neighbour at boundary levels is multiplied by an exactly-zero
            # weight half, so indexing prev[-1] / prev[0] there is harmless.
            lhs_ref[:, :ed] = prev[l - 1].astype(mxu_dtype)
            lhs_ref[:, ed:] = prev[(l + 1) % n_levels].astype(mxu_dtype)
            budt = jnp.dot(lhs_ref[...], fw_ref[l],
                           preferred_element_type=f32) + fc_ref[l]

            # Attention-weighted average over positions (self-attention on xn):
            # max-subtracted exp + deferred normalization.
            # TODO(synk): the torch `sum(prev)!=0` skip is only reproduced
            # exactly while bn_beta == 0; with trained bn_beta the reference
            # would skip all-zero levels and we do not.
            xb = xn.astype(mxu_dtype)
            g = lax.dot_general(xb, xb, (((1,), (1,)), ((), ())),
                                preferred_element_type=f32)        # (HW, HW)
            s = beta * g
            s = s - jnp.max(s, axis=1, keepdims=True)
            aw = jnp.exp(s)
            denom = jnp.sum(aw, axis=1, keepdims=True)
            awa = (jnp.dot(aw.astype(mxu_dtype), xb,
                           preferred_element_type=f32)
                   * pl.reciprocal(denom, approx=True))

            out_ref[l] = w1 * xn + budt + w4 * awa


# ------------------------------ jitted forward ------------------------------

@functools.partial(jax.jit, static_argnames=(
    "n_cycles", "n_levels", "embedding_dims", "patch_size", "L", "beta",
    "mxu_dtype"))
def glom_forward(x, params, *, n_cycles, n_levels, embedding_dims, patch_size,
                 L=10, beta=0.001, mxu_dtype=jnp.bfloat16):
    E = embedding_dims
    ph, pw = patch_size
    N, C, Hin, Win = x.shape
    # TODO(synk): batch is fixed to 1 — the reference module's attention
    # broadcast (N,E,H,W) * (N,H,W) is only well-defined for batch == 1.
    assert N == 1, "reference attention broadcast requires batch == 1"
    H, W = Hin // ph, Win // pw
    HW = H * W
    CPP = C * ph * pw

    # --- one-time layout glue + constant folding (outside the hot loop) ---
    patches = (x.reshape(N, C, H, ph, W, pw)
                .transpose(0, 2, 4, 1, 3, 5)
                .reshape(N * HW, CPP)).astype(mxu_dtype)           # (HW, C*ph*pw)
    conv_wT = params['conv_w'].reshape(E, CPP).T.astype(mxu_dtype)  # (CPP, E)
    conv_b = params['conv_b'].reshape(1, E).astype(jnp.float32)

    loc_table = make_loc_table(H, W, L)                             # compile-time const

    # Fuse the Linear(E+4L -> E) pair per level:
    #   w2*bu(x) + w3*td(y) = [x|y] @ [w2*W_bu_feat ; w3*W_td_feat] + const
    # with const = w2*(loc@W_bu_loc.T + b_bu) + w3*(loc@W_td_loc.T + b_td).
    w2, w3 = params['w2'], params['w3']
    zero_w = jnp.zeros((E, E), jnp.float32)
    zero_c = jnp.zeros((HW, E), jnp.float32)
    fw, fc = [], []
    for l in range(n_levels):
        bw = params['bu_w'][l]
        tw = params['td_w'][l]
        bu_half = w2 * bw[:, :E].T if l > 0 else zero_w
        td_half = w3 * tw[:, :E].T if l < n_levels - 1 else zero_w
        bu_c = (w2 * (loc_table @ bw[:, E:].T + params['bu_b'][l])
                if l > 0 else zero_c)
        td_c = (w3 * (loc_table @ tw[:, E:].T + params['td_b'][l])
                if l < n_levels - 1 else zero_c)
        fw.append(jnp.concatenate([bu_half, td_half], axis=0))      # (2E, E)
        fc.append(bu_c + td_c)                                      # (HW, E)
    fw = jnp.stack(fw).astype(mxu_dtype)                            # (n_levels, 2E, E)
    fc = jnp.stack(fc).astype(jnp.float32)                          # (n_levels, HW, E)

    gamma = jnp.stack(params['bn_gamma']).reshape(n_levels, 1, E).astype(jnp.float32)
    betabn = jnp.stack(params['bn_beta']).reshape(n_levels, 1, E).astype(jnp.float32)
    scalars = jnp.stack([params['w1'], params['w4']]).astype(jnp.float32)  # -> SMEM

    operands = (scalars, patches, conv_wT, conv_b, fw, fc, gamma, betabn)

    # Explicit VMEM budget with headroom (v5e default scoped limit is 16 MiB;
    # v7x physical VMEM is 64 MiB — clamp to that).
    itemsize = lambda a: int(jnp.dtype(a.dtype).itemsize)
    in_bytes = sum(int(np.prod(a.shape)) * itemsize(a) for a in operands)
    out_bytes = 4 * n_levels * HW * E
    scratch_bytes = HW * 2 * E * int(jnp.dtype(mxu_dtype).itemsize)
    vmem_limit = int(min(64 << 20,
                         max(16 << 20,
                             4 * (in_bytes + out_bytes + scratch_bytes) + (4 << 20))))

    # advisory cost estimate for the XLA scheduler
    flops = (2 * HW * CPP * E
             + n_cycles * n_levels * (2 * HW * (2 * E) * E   # fused bu+td matmul
                                      + 4 * HW * HW * E      # gram + awa matmuls
                                      + 14 * HW * E))        # BN + combine (VPU)
    transcendentals = n_cycles * n_levels * (HW * HW + HW + E)

    # TODO(synk): at realistic sizes, pad/round E to a multiple of 128 for
    # lane-dense stores and consider splitting the attention rows across the
    # second TensorCore on v7x; at HW=16/E=32 both are not worth the overhead.
    out = pl.pallas_call(
        functools.partial(_glom_kernel, n_cycles, n_levels, HW, E, float(beta),
                          mxu_dtype),
        in_specs=[pl.BlockSpec(memory_space=pltpu.MemorySpace.SMEM)]
                 + [pl.BlockSpec(memory_space=pltpu.MemorySpace.VMEM)
                    for _ in range(len(operands) - 1)],
        out_specs=pl.BlockSpec(memory_space=pltpu.MemorySpace.VMEM),
        out_shape=jax.ShapeDtypeStruct((n_levels, HW, E), jnp.float32),
        scratch_shapes=[pltpu.VMEM((HW, 2 * E), mxu_dtype)],
        compiler_params=pltpu.CompilerParams(vmem_limit_bytes=vmem_limit),
        cost_estimate=pl.CostEstimate(flops=flops,
                                      transcendentals=transcendentals,
                                      bytes_accessed=in_bytes + out_bytes),
    )(*operands)

    # (n_levels, HW, E) -> (1, E, H, W, n_levels), matching the torch output
    return out.reshape(n_levels, H, W, E).transpose(3, 1, 2, 0)[None]


# --------------------------------- params -----------------------------------

def init_params(key, n_levels, in_channels, E, patch, L):
    ph, pw = patch
    keys = jax.random.split(key, 2 + 4 * n_levels)
    fan_conv = in_channels * ph * pw
    fan_lin = E + 4 * L
    params = {
        'conv_w': jax.random.uniform(keys[0], (E, in_channels, ph, pw),
                                     jnp.float32, -1.0, 1.0) / np.sqrt(fan_conv),
        'conv_b': jax.random.uniform(keys[1], (E,), jnp.float32, -1.0, 1.0) / np.sqrt(fan_conv),
        'bu_w': [], 'bu_b': [], 'td_w': [], 'td_b': [],
        'bn_gamma': [], 'bn_beta': [],
        'w1': jnp.float32(1.0), 'w2': jnp.float32(1.0),
        'w3': jnp.float32(1.0), 'w4': jnp.float32(1.0),
    }
    for i in range(n_levels):
        k = keys[2 + 4 * i: 6 + 4 * i]
        params['bu_w'].append(jax.random.uniform(k[0], (E, fan_lin), jnp.float32, -1.0, 1.0) / np.sqrt(fan_lin))
        params['bu_b'].append(jax.random.uniform(k[1], (E,), jnp.float32, -1.0, 1.0) / np.sqrt(fan_lin))
        params['td_w'].append(jax.random.uniform(k[2], (E, fan_lin), jnp.float32, -1.0, 1.0) / np.sqrt(fan_lin))
        params['td_b'].append(jax.random.uniform(k[3], (E,), jnp.float32, -1.0, 1.0) / np.sqrt(fan_lin))
        params['bn_gamma'].append(jnp.ones((E,), jnp.float32))
        params['bn_beta'].append(jnp.zeros((E,), jnp.float32))
    return params


# ----------------------------------- main ------------------------------------

if __name__ == "__main__":
    key = jax.random.PRNGKey(0)
    n_cycles, n_levels = 2, 3
    in_channels, E = 4, 32
    patch = (4, 4)
    L, beta = 10, 0.001

    kp, kx = jax.random.split(key)
    params = init_params(kp, n_levels, in_channels, E, patch, L)
    x = jax.random.normal(kx, (1, in_channels, 16, 16), jnp.float32)

    out = glom_forward(x, params, n_cycles=n_cycles, n_levels=n_levels,
                       embedding_dims=E, patch_size=patch, L=L, beta=beta)
    out = jax.block_until_ready(out)

    assert out.shape == (1, E, 16 // patch[0], 16 // patch[1], n_levels), out.shape
    assert bool(jnp.all(jnp.isfinite(out)))
    print("KERNEL_OK")
</pallas_src>

<mosaic_0001>
module attributes {stable_mosaic.version = 11 : i64} {
  func.func @_glom_kernel(%arg0: memref<2xf32, #tpu.memory_space<smem>>, %arg1: memref<16x64xbf16, #tpu.memory_space<vmem>>, %arg2: memref<64x32xbf16, #tpu.memory_space<vmem>>, %arg3: memref<1x32xf32, #tpu.memory_space<vmem>>, %arg4: memref<3x64x32xbf16, #tpu.memory_space<vmem>>, %arg5: memref<3x16x32xf32, #tpu.memory_space<vmem>>, %arg6: memref<3x1x32xf32, #tpu.memory_space<vmem>>, %arg7: memref<3x1x32xf32, #tpu.memory_space<vmem>>, %arg8: memref<3x16x32xf32, #tpu.memory_space<vmem>>, %arg9: memref<16x64xbf16, #tpu.memory_space<vmem>>) attributes {dimension_semantics = [], scalar_prefetch = 0 : i64, scratch_operands = 1 : i64, tpu.core_type = #tpu.core_type<tc>} {
    %c0 = arith.constant 0 : index
    %0 = memref.load %arg0[%c0] : memref<2xf32, #tpu.memory_space<smem>>
    %c1 = arith.constant 1 : index
    %1 = memref.load %arg0[%c1] : memref<2xf32, #tpu.memory_space<smem>>
    %c0_0 = arith.constant 0 : index
    %c0_1 = arith.constant 0 : index
    %2 = vector.load %arg1[%c0_0, %c0_1] : memref<16x64xbf16, #tpu.memory_space<vmem>>, vector<16x64xbf16>
    %c0_2 = arith.constant 0 : index
    %c0_3 = arith.constant 0 : index
    %3 = vector.load %arg2[%c0_2, %c0_3] : memref<64x32xbf16, #tpu.memory_space<vmem>>, vector<64x32xbf16>
    %cst = arith.constant dense<0.000000e+00> : vector<16x32xf32>
    %4 = tpu.matmul %2, %3, %cst {dimension_numbers = #tpu.dot_dimension_numbers<[1], [0], [0], [1], [0, 0, 1, 1], [], []>} : vector<16x64xbf16>, vector<64x32xbf16>, vector<16x32xf32> -> vector<16x32xf32>
    %c0_4 = arith.constant 0 : index
    %c0_5 = arith.constant 0 : index
    %5 = vector.load %arg3[%c0_4, %c0_5] : memref<1x32xf32, #tpu.memory_space<vmem>>, vector<1x32xf32>
    %6 = vector.broadcast %5 : vector<1x32xf32> to vector<16x32xf32>
    %7 = arith.addf %4, %6 : vector<16x32xf32>
    %c0_6 = arith.constant 0 : index
    %c0_7 = arith.constant 0 : index
    %c0_8 = arith.constant 0 : index
    %8 = vector.load %arg8[%c0_6, %c0_7, %c0_8] : memref<3x16x32xf32, #tpu.memory_space<vmem>>, vector<1x16x32xf32>
    %9 = vector.shape_cast %8 : vector<1x16x32xf32> to vector<16x32xf32>
    %10 = vector.shape_cast %7 : vector<16x32xf32> to vector<1x16x32xf32>
    tpu.vector_store %arg8[%c0_6, %c0_7, %c0_8], %10 {strides = array<i32>} : memref<3x16x32xf32, #tpu.memory_space<vmem>>, vector<1x16x32xf32>,
    %cst_9 = arith.constant 0.000000e+00 : f32
    %11 = vector.broadcast %cst_9 : f32 to vector<16x32xf32>
    %c1_10 = arith.constant 1 : index
    %c0_11 = arith.constant 0 : index
    %c0_12 = arith.constant 0 : index
    %12 = vector.load %arg8[%c1_10, %c0_11, %c0_12] : memref<3x16x32xf32, #tpu.memory_space<vmem>>, vector<1x16x32xf32>
    %13 = vector.shape_cast %12 : vector<1x16x32xf32> to vector<16x32xf32>
    %14 = vector.shape_cast %11 : vector<16x32xf32> to vector<1x16x32xf32>
    tpu.vector_store %arg8[%c1_10, %c0_11, %c0_12], %14 {strides = array<i32>} : memref<3x16x32xf32, #tpu.memory_space<vmem>>, vector<1x16x32xf32>,
    %cst_13 = arith.constant 0.000000e+00 : f32
    %15 = vector.broadcast %cst_13 : f32 to vector<16x32xf32>
    %c2 = arith.constant 2 : index
    %c0_14 = arith.constant 0 : index
    %c0_15 = arith.constant 0 : index
    %16 = vector.load %arg8[%c2, %c0_14, %c0_15] : memref<3x16x32xf32, #tpu.memory_space<vmem>>, vector<1x16x32xf32>
    %17 = vector.shape_cast %16 : vector<1x16x32xf32> to vector<16x32xf32>
    %18 = vector.shape_cast %15 : vector<16x32xf32> to vector<1x16x32xf32>
    tpu.vector_store %arg8[%c2, %c0_14, %c0_15], %18 {strides = array<i32>} : memref<3x16x32xf32, #tpu.memory_space<vmem>>, vector<1x16x32xf32>,
    %c0_i32 = arith.constant 0 : i32
    %c2_i32 = arith.constant 2 : i32
    %19 = arith.addi %c0_i32, %c2_i32 : i32
    %c1_i32 = arith.constant 1 : i32
    scf.for %arg10 = %c0_i32 to %19 step %c1_i32  : i32 {
      %c0_16 = arith.constant 0 : index
      %c0_17 = arith.constant 0 : index
      %c0_18 = arith.constant 0 : index
      %20 = vector.load %arg8[%c0_16, %c0_17, %c0_18] : memref<3x16x32xf32, #tpu.memory_space<vmem>>, vector<1x16x32xf32>
      %21 = vector.shape_cast %20 : vector<1x16x32xf32> to vector<16x32xf32>
      %c1_19 = arith.constant 1 : index
      %c0_20 = arith.constant 0 : index
      %c0_21 = arith.constant 0 : index
      %22 = vector.load %arg8[%c1_19, %c0_20, %c0_21] : memref<3x16x32xf32, #tpu.memory_space<vmem>>, vector<1x16x32xf32>
      %23 = vector.shape_cast %22 : vector<1x16x32xf32> to vector<16x32xf32>
      %c2_22 = arith.constant 2 : index
      %c0_23 = arith.constant 0 : index
      %c0_24 = arith.constant 0 : index
      %24 = vector.load %arg8[%c2_22, %c0_23, %c0_24] : memref<3x16x32xf32, #tpu.memory_space<vmem>>, vector<1x16x32xf32>
      %25 = vector.shape_cast %24 : vector<1x16x32xf32> to vector<16x32xf32>
      %cst_25 = arith.constant dense<0.000000e+00> : vector<32xf32>
      %26 = vector.multi_reduction <add>, %21, %cst_25 [0] : vector<16x32xf32> to vector<32xf32>
      %27 = vector.shape_cast %26 : vector<32xf32> to vector<1x32xf32>
      %28 = arith.mulf %21, %21 : vector<16x32xf32>
      %cst_26 = arith.constant dense<0.000000e+00> : vector<32xf32>
      %29 = vector.multi_reduction <add>, %28, %cst_26 [0] : vector<16x32xf32> to vector<32xf32>
      %30 = vector.shape_cast %29 : vector<32xf32> to vector<1x32xf32>
      %cst_27 = arith.constant 6.250000e-02 : f32
      %31 = vector.broadcast %cst_27 : f32 to vector<1x32xf32>
      %32 = arith.mulf %27, %31 : vector<1x32xf32>
      %cst_28 = arith.constant 6.250000e-02 : f32
      %33 = vector.broadcast %cst_28 : f32 to vector<1x32xf32>
      %34 = arith.mulf %30, %33 : vector<1x32xf32>
      %35 = arith.mulf %32, %32 : vector<1x32xf32>
      %36 = arith.subf %34, %35 : vector<1x32xf32>
      %cst_29 = arith.constant 9.99999974E-6 : f32
      %37 = vector.broadcast %cst_29 : f32 to vector<1x32xf32>
      %38 = arith.addf %36, %37 : vector<1x32xf32>
      %39 = math.rsqrt %38 : vector<1x32xf32>
      %c0_30 = arith.constant 0 : index
      %c0_31 = arith.constant 0 : index
      %c0_32 = arith.constant 0 : index
      %40 = vector.load %arg6[%c0_30, %c0_31, %c0_32] : memref<3x1x32xf32, #tpu.memory_space<vmem>>, vector<1x1x32xf32>
      %41 = vector.shape_cast %40 : vector<1x1x32xf32> to vector<1x32xf32>
      %42 = arith.mulf %39, %41 : vector<1x32xf32>
      %43 = vector.broadcast %42 : vector<1x32xf32> to vector<16x32xf32>
      %44 = arith.mulf %21, %43 : vector<16x32xf32>
      %c0_33 = arith.constant 0 : index
      %c0_34 = arith.constant 0 : index
      %c0_35 = arith.constant 0 : index
      %45 = vector.load %arg7[%c0_33, %c0_34, %c0_35] : memref<3x1x32xf32, #tpu.memory_space<vmem>>, vector<1x1x32xf32>
      %46 = vector.shape_cast %45 : vector<1x1x32xf32> to vector<1x32xf32>
      %47 = arith.mulf %32, %42 : vector<1x32xf32>
      %48 = arith.subf %46, %47 : vector<1x32xf32>
      %49 = vector.broadcast %48 : vector<1x32xf32> to vector<16x32xf32>
      %50 = arith.addf %44, %49 : vector<16x32xf32>
      %51 = arith.truncf %25 : vector<16x32xf32> to vector<16x32xbf16>
      %c0_36 = arith.constant 0 : index
      %c0_37 = arith.constant 0 : index
      %52 = vector.load %arg9[%c0_36, %c0_37] : memref<16x64xbf16, #tpu.memory_space<vmem>>, vector<16x32xbf16>
      tpu.vector_store %arg9[%c0_36, %c0_37], %51 {strides = array<i32>} : memref<16x64xbf16, #tpu.memory_space<vmem>>, vector<16x32xbf16>,
      %53 = arith.truncf %23 : vector<16x32xf32> to vector<16x32xbf16>
      %c0_38 = arith.constant 0 : index
      %c32 = arith.constant 32 : index
      %54 = vector.load %arg9[%c0_38, %c32] : memref<16x64xbf16, #tpu.memory_space<vmem>>, vector<16x32xbf16>
      tpu.vector_store %arg9[%c0_38, %c32], %53 {strides = array<i32>} : memref<16x64xbf16, #tpu.memory_space<vmem>>, vector<16x32xbf16>,
      %c0_39 = arith.constant 0 : index
      %c0_40 = arith.constant 0 : index
      %55 = vector.load %arg9[%c0_39, %c0_40] : memref<16x64xbf16, #tpu.memory_space<vmem>>, vector<16x64xbf16>
      %c0_41 = arith.constant 0 : index
      %c0_42 = arith.constant 0 : index
      %c0_43 = arith.constant 0 : index
      %56 = vector.load %arg4[%c0_41, %c0_42, %c0_43] : memref<3x64x32xbf16, #tpu.memory_space<vmem>>, vector<1x64x32xbf16>
      %57 = vector.shape_cast %56 : vector<1x64x32xbf16> to vector<64x32xbf16>
      %cst_44 = arith.constant dense<0.000000e+00> : vector<16x32xf32>
      %58 = tpu.matmul %55, %57, %cst_44 {dimension_numbers = #tpu.dot_dimension_numbers<[1], [0], [0], [1], [0, 0, 1, 1], [], []>} : vector<16x64xbf16>, vector<64x32xbf16>, vector<16x32xf32> -> vector<16x32xf32>
      %c0_45 = arith.constant 0 : index
      %c0_46 = arith.constant 0 : index
      %c0_47 = arith.constant 0 : index
      %59 = vector.load %arg5[%c0_45, %c0_46, %c0_47] : memref<3x16x32xf32, #tpu.memory_space<vmem>>, vector<1x16x32xf32>
      %60 = vector.shape_cast %59 : vector<1x16x32xf32> to vector<16x32xf32>
      %61 = arith.addf %58, %60 : vector<16x32xf32>
      %62 = arith.truncf %50 : vector<16x32xf32> to vector<16x32xbf16>
      %cst_48 = arith.constant dense<0.000000e+00> : vector<16x16xf32>
      %63 = tpu.matmul %62, %62, %cst_48 {dimension_numbers = #tpu.dot_dimension_numbers<[1], [1], [0], [0], [0, 0, 1, 0], [], []>} : vector<16x32xbf16>, vector<16x32xbf16>, vector<16x16xf32> -> vector<16x16xf32>
      %cst_49 = arith.constant 1.000000e-03 : f32
      %64 = vector.broadcast %cst_49 : f32 to vector<16x16xf32>
      %65 = arith.mulf %64, %63 : vector<16x16xf32>
      %cst_50 = arith.constant dense<0xFF800000> : vector<16xf32>
      %66 = vector.multi_reduction <maximumf>, %65, %cst_50 [1] : vector<16x16xf32> to vector<16xf32>
      %67 = vector.shape_cast %66 : vector<16xf32> to vector<16x1xf32>
      %68 = vector.broadcast %67 : vector<16x1xf32> to vector<16x16xf32>
      %69 = arith.subf %65, %68 : vector<16x16xf32>
      %70 = math.exp %69 : vector<16x16xf32>
      %cst_51 = arith.constant dense<0.000000e+00> : vector<16xf32>
      %71 = vector.multi_reduction <add>, %70, %cst_51 [1] : vector<16x16xf32> to vector<16xf32>
      %72 = vector.shape_cast %71 : vector<16xf32> to vector<16x1xf32>
      %73 = arith.truncf %70 : vector<16x16xf32> to vector<16x16xbf16>
      %cst_52 = arith.constant dense<0.000000e+00> : vector<16x32xf32>
      %74 = tpu.matmul %73, %62, %cst_52 {dimension_numbers = #tpu.dot_dimension_numbers<[1], [0], [0], [1], [0, 0, 1, 1], [], []>} : vector<16x16xbf16>, vector<16x32xbf16>, vector<16x32xf32> -> vector<16x32xf32>
      %75 = tpu.reciprocal %72 {approx = true} : vector<16x1xf32> -> vector<16x1xf32>
      %76 = vector.broadcast %75 : vector<16x1xf32> to vector<16x32xf32>
      %77 = arith.mulf %74, %76 : vector<16x32xf32>
      %78 = vector.broadcast %0 : f32 to vector<16x32xf32>
      %79 = arith.mulf %78, %50 : vector<16x32xf32>
      %80 = arith.addf %79, %61 : vector<16x32xf32>
      %81 = vector.broadcast %1 : f32 to vector<16x32xf32>
      %82 = arith.mulf %81, %77 : vector<16x32xf32>
      %83 = arith.addf %80, %82 : vector<16x32xf32>
      %c0_53 = arith.constant 0 : index
      %c0_54 = arith.constant 0 : index
      %c0_55 = arith.constant 0 : index
      %84 = vector.load %arg8[%c0_53, %c0_54, %c0_55] : memref<3x16x32xf32, #tpu.memory_space<vmem>>, vector<1x16x32xf32>
      %85 = vector.shape_cast %84 : vector<1x16x32xf32> to vector<16x32xf32>
      %86 = vector.shape_cast %83 : vector<16x32xf32> to vector<1x16x32xf32>
      tpu.vector_store %arg8[%c0_53, %c0_54, %c0_55], %86 {strides = array<i32>} : memref<3x16x32xf32, #tpu.memory_space<vmem>>, vector<1x16x32xf32>,
      %cst_56 = arith.constant dense<0.000000e+00> : vector<32xf32>
      %87 = vector.multi_reduction <add>, %23, %cst_56 [0] : vector<16x32xf32> to vector<32xf32>
      %88 = vector.shape_cast %87 : vector<32xf32> to vector<1x32xf32>
      %89 = arith.mulf %23, %23 : vector<16x32xf32>
      %cst_57 = arith.constant dense<0.000000e+00> : vector<32xf32>
      %90 = vector.multi_reduction <add>, %89, %cst_57 [0] : vector<16x32xf32> to vector<32xf32>
      %91 = vector.shape_cast %90 : vector<32xf32> to vector<1x32xf32>
      %cst_58 = arith.constant 6.250000e-02 : f32
      %92 = vector.broadcast %cst_58 : f32 to vector<1x32xf32>
      %93 = arith.mulf %88, %92 : vector<1x32xf32>
      %cst_59 = arith.constant 6.250000e-02 : f32
      %94 = vector.broadcast %cst_59 : f32 to vector<1x32xf32>
      %95 = arith.mulf %91, %94 : vector<1x32xf32>
      %96 = arith.mulf %93, %93 : vector<1x32xf32>
      %97 = arith.subf %95, %96 : vector<1x32xf32>
      %cst_60 = arith.constant 9.99999974E-6 : f32
      %98 = vector.broadcast %cst_60 : f32 to vector<1x32xf32>
      %99 = arith.addf %97, %98 : vector<1x32xf32>
      %100 = math.rsqrt %99 : vector<1x32xf32>
      %c1_61 = arith.constant 1 : index
      %c0_62 = arith.constant 0 : index
      %c0_63 = arith.constant 0 : index
      %101 = vector.load %arg6[%c1_61, %c0_62, %c0_63] : memref<3x1x32xf32, #tpu.memory_space<vmem>>, vector<1x1x32xf32>
      %102 = vector.shape_cast %101 : vector<1x1x32xf32> to vector<1x32xf32>
      %103 = arith.mulf %100, %102 : vector<1x32xf32>
      %104 = vector.broadcast %103 : vector<1x32xf32> to vector<16x32xf32>
      %105 = arith.mulf %23, %104 : vector<16x32xf32>
      %c1_64 = arith.constant 1 : index
      %c0_65 = arith.constant 0 : index
      %c0_66 = arith.constant 0 : index
      %106 = vector.load %arg7[%c1_64, %c0_65, %c0_66] : memref<3x1x32xf32, #tpu.memory_space<vmem>>, vector<1x1x32xf32>
      %107 = vector.shape_cast %106 : vector<1x1x32xf32> to vector<1x32xf32>
      %108 = arith.mulf %93, %103 : vector<1x32xf32>
      %109 = arith.subf %107, %108 : vector<1x32xf32>
      %110 = vector.broadcast %109 : vector<1x32xf32> to vector<16x32xf32>
      %111 = arith.addf %105, %110 : vector<16x32xf32>
      %112 = arith.truncf %50 : vector<16x32xf32> to vector<16x32xbf16>
      %c0_67 = arith.constant 0 : index
      %c0_68 = arith.constant 0 : index
      %113 = vector.load %arg9[%c0_67, %c0_68] : memref<16x64xbf16, #tpu.memory_space<vmem>>, vector<16x32xbf16>
      tpu.vector_store %arg9[%c0_67, %c0_68], %112 {strides = array<i32>} : memref<16x64xbf16, #tpu.memory_space<vmem>>, vector<16x32xbf16>,
      %114 = arith.truncf %25 : vector<16x32xf32> to vector<16x32xbf16>
      %c0_69 = arith.constant 0 : index
      %c32_70 = arith.constant 32 : index
      %115 = vector.load %arg9[%c0_69, %c32_70] : memref<16x64xbf16, #tpu.memory_space<vmem>>, vector<16x32xbf16>
      tpu.vector_store %arg9[%c0_69, %c32_70], %114 {strides = array<i32>} : memref<16x64xbf16, #tpu.memory_space<vmem>>, vector<16x32xbf16>,
      %c0_71 = arith.constant 0 : index
      %c0_72 = arith.constant 0 : index
      %116 = vector.load %arg9[%c0_71, %c0_72] : memref<16x64xbf16, #tpu.memory_space<vmem>>, vector<16x64xbf16>
      %c1_73 = arith.constant 1 : index
      %c0_74 = arith.constant 0 : index
      %c0_75 = arith.constant 0 : index
      %117 = vector.load %arg4[%c1_73, %c0_74, %c0_75] : memref<3x64x32xbf16, #tpu.memory_space<vmem>>, vector<1x64x32xbf16>
      %118 = vector.shape_cast %117 : vector<1x64x32xbf16> to vector<64x32xbf16>
      %cst_76 = arith.constant dense<0.000000e+00> : vector<16x32xf32>
      %119 = tpu.matmul %116, %118, %cst_76 {dimension_numbers = #tpu.dot_dimension_numbers<[1], [0], [0], [1], [0, 0, 1, 1], [], []>} : vector<16x64xbf16>, vector<64x32xbf16>, vector<16x32xf32> -> vector<16x32xf32>
      %c1_77 = arith.constant 1 : index
      %c0_78 = arith.constant 0 : index
      %c0_79 = arith.constant 0 : index
      %120 = vector.load %arg5[%c1_77, %c0_78, %c0_79] : memref<3x16x32xf32, #tpu.memory_space<vmem>>, vector<1x16x32xf32>
      %121 = vector.shape_cast %120 : vector<1x16x32xf32> to vector<16x32xf32>
      %122 = arith.addf %119, %121 : vector<16x32xf32>
      %123 = arith.truncf %111 : vector<16x32xf32> to vector<16x32xbf16>
      %cst_80 = arith.constant dense<0.000000e+00> : vector<16x16xf32>
      %124 = tpu.matmul %123, %123, %cst_80 {dimension_numbers = #tpu.dot_dimension_numbers<[1], [1], [0], [0], [0, 0, 1, 0], [], []>} : vector<16x32xbf16>, vector<16x32xbf16>, vector<16x16xf32> -> vector<16x16xf32>
      %cst_81 = arith.constant 1.000000e-03 : f32
      %125 = vector.broadcast %cst_81 : f32 to vector<16x16xf32>
      %126 = arith.mulf %125, %124 : vector<16x16xf32>
      %cst_82 = arith.constant dense<0xFF800000> : vector<16xf32>
      %127 = vector.multi_reduction <maximumf>, %126, %cst_82 [1] : vector<16x16xf32> to vector<16xf32>
      %128 = vector.shape_cast %127 : vector<16xf32> to vector<16x1xf32>
      %129 = vector.broadcast %128 : vector<16x1xf32> to vector<16x16xf32>
      %130 = arith.subf %126, %129 : vector<16x16xf32>
      %131 = math.exp %130 : vector<16x16xf32>
      %cst_83 = arith.constant dense<0.000000e+00> : vector<16xf32>
      %132 = vector.multi_reduction <add>, %131, %cst_83 [1] : vector<16x16xf32> to vector<16xf32>
      %133 = vector.shape_cast %132 : vector<16xf32> to vector<16x1xf32>
      %134 = arith.truncf %131 : vector<16x16xf32> to vector<16x16xbf16>
      %cst_84 = arith.constant dense<0.000000e+00> : vector<16x32xf32>
      %135 = tpu.matmul %134, %123, %cst_84 {dimension_numbers = #tpu.dot_dimension_numbers<[1], [0], [0], [1], [0, 0, 1, 1], [], []>} : vector<16x16xbf16>, vector<16x32xbf16>, vector<16x32xf32> -> vector<16x32xf32>
      %136 = tpu.reciprocal %133 {approx = true} : vector<16x1xf32> -> vector<16x1xf32>
      %137 = vector.broadcast %136 : vector<16x1xf32> to vector<16x32xf32>
      %138 = arith.mulf %135, %137 : vector<16x32xf32>
      %139 = vector.broadcast %0 : f32 to vector<16x32xf32>
      %140 = arith.mulf %139, %111 : vector<16x32xf32>
      %141 = arith.addf %140, %122 : vector<16x32xf32>
      %142 = vector.broadcast %1 : f32 to vector<16x32xf32>
      %143 = arith.mulf %142, %138 : vector<16x32xf32>
      %144 = arith.addf %141, %143 : vector<16x32xf32>
      %c1_85 = arith.constant 1 : index
      %c0_86 = arith.constant 0 : index
      %c0_87 = arith.constant 0 : index
      %145 = vector.load %arg8[%c1_85, %c0_86, %c0_87] : memref<3x16x32xf32, #tpu.memory_space<vmem>>, vector<1x16x32xf32>
      %146 = vector.shape_cast %145 : vector<1x16x32xf32> to vector<16x32xf32>
      %147 = vector.shape_cast %144 : vector<16x32xf32> to vector<1x16x32xf32>
      tpu.vector_store %arg8[%c1_85, %c0_86, %c0_87], %147 {strides = array<i32>} : memref<3x16x32xf32, #tpu.memory_space<vmem>>, vector<1x16x32xf32>,
      %cst_88 = arith.constant dense<0.000000e+00> : vector<32xf32>
      %148 = vector.multi_reduction <add>, %25, %cst_88 [0] : vector<16x32xf32> to vector<32xf32>
      %149 = vector.shape_cast %148 : vector<32xf32> to vector<1x32xf32>
      %150 = arith.mulf %25, %25 : vector<16x32xf32>
      %cst_89 = arith.constant dense<0.000000e+00> : vector<32xf32>
      %151 = vector.multi_reduction <add>, %150, %cst_89 [0] : vector<16x32xf32> to vector<32xf32>
      %152 = vector.shape_cast %151 : vector<32xf32> to vector<1x32xf32>
      %cst_90 = arith.constant 6.250000e-02 : f32
      %153 = vector.broadcast %cst_90 : f32 to vector<1x32xf32>
      %154 = arith.mulf %149, %153 : vector<1x32xf32>
      %cst_91 = arith.constant 6.250000e-02 : f32
      %155 = vector.broadcast %cst_91 : f32 to vector<1x32xf32>
      %156 = arith.mulf %152, %155 : vector<1x32xf32>
      %157 = arith.mulf %154, %154 : vector<1x32xf32>
      %158 = arith.subf %156, %157 : vector<1x32xf32>
      %cst_92 = arith.constant 9.99999974E-6 : f32
      %159 = vector.broadcast %cst_92 : f32 to vector<1x32xf32>
      %160 = arith.addf %158, %159 : vector<1x32xf32>
      %161 = math.rsqrt %160 : vector<1x32xf32>
      %c2_93 = arith.constant 2 : index
      %c0_94 = arith.constant 0 : index
      %c0_95 = arith.constant 0 : index
      %162 = vector.load %arg6[%c2_93, %c0_94, %c0_95] : memref<3x1x32xf32, #tpu.memory_space<vmem>>, vector<1x1x32xf32>
      %163 = vector.shape_cast %162 : vector<1x1x32xf32> to vector<1x32xf32>
      %164 = arith.mulf %161, %163 : vector<1x32xf32>
      %165 = vector.broadcast %164 : vector<1x32xf32> to vector<16x32xf32>
      %166 = arith.mulf %25, %165 : vector<16x32xf32>
      %c2_96 = arith.constant 2 : index
      %c0_97 = arith.constant 0 : index
      %c0_98 = arith.constant 0 : index
      %167 = vector.load %arg7[%c2_96, %c0_97, %c0_98] : memref<3x1x32xf32, #tpu.memory_space<vmem>>, vector<1x1x32xf32>
      %168 = vector.shape_cast %167 : vector<1x1x32xf32> to vector<1x32xf32>
      %169 = arith.mulf %154, %164 : vector<1x32xf32>
      %170 = arith.subf %168, %169 : vector<1x32xf32>
      %171 = vector.broadcast %170 : vector<1x32xf32> to vector<16x32xf32>
      %172 = arith.addf %166, %171 : vector<16x32xf32>
      %173 = arith.truncf %111 : vector<16x32xf32> to vector<16x32xbf16>
      %c0_99 = arith.constant 0 : index
      %c0_100 = arith.constant 0 : index
      %174 = vector.load %arg9[%c0_99, %c0_100] : memref<16x64xbf16, #tpu.memory_space<vmem>>, vector<16x32xbf16>
      tpu.vector_store %arg9[%c0_99, %c0_100], %173 {strides = array<i32>} : memref<16x64xbf16, #tpu.memory_space<vmem>>, vector<16x32xbf16>,
      %175 = arith.truncf %50 : vector<16x32xf32> to vector<16x32xbf16>
      %c0_101 = arith.constant 0 : index
      %c32_102 = arith.constant 32 : index
      %176 = vector.load %arg9[%c0_101, %c32_102] : memref<16x64xbf16, #tpu.memory_space<vmem>>, vector<16x32xbf16>
      tpu.vector_store %arg9[%c0_101, %c32_102], %175 {strides = array<i32>} : memref<16x64xbf16, #tpu.memory_space<vmem>>, vector<16x32xbf16>,
      %c0_103 = arith.constant 0 : index
      %c0_104 = arith.constant 0 : index
      %177 = vector.load %arg9[%c0_103, %c0_104] : memref<16x64xbf16, #tpu.memory_space<vmem>>, vector<16x64xbf16>
      %c2_105 = arith.constant 2 : index
      %c0_106 = arith.constant 0 : index
      %c0_107 = arith.constant 0 : index
      %178 = vector.load %arg4[%c2_105, %c0_106, %c0_107] : memref<3x64x32xbf16, #tpu.memory_space<vmem>>, vector<1x64x32xbf16>
      %179 = vector.shape_cast %178 : vector<1x64x32xbf16> to vector<64x32xbf16>
      %cst_108 = arith.constant dense<0.000000e+00> : vector<16x32xf32>
      %180 = tpu.matmul %177, %179, %cst_108 {dimension_numbers = #tpu.dot_dimension_numbers<[1], [0], [0], [1], [0, 0, 1, 1], [], []>} : vector<16x64xbf16>, vector<64x32xbf16>, vector<16x32xf32> -> vector<16x32xf32>
      %c2_109 = arith.constant 2 : index
      %c0_110 = arith.constant 0 : index
      %c0_111 = arith.constant 0 : index
      %181 = vector.load %arg5[%c2_109, %c0_110, %c0_111] : memref<3x16x32xf32, #tpu.memory_space<vmem>>, vector<1x16x32xf32>
      %182 = vector.shape_cast %181 : vector<1x16x32xf32> to vector<16x32xf32>
      %183 = arith.addf %180, %182 : vector<16x32xf32>
      %184 = arith.truncf %172 : vector<16x32xf32> to vector<16x32xbf16>
      %cst_112 = arith.constant dense<0.000000e+00> : vector<16x16xf32>
      %185 = tpu.matmul %184, %184, %cst_112 {dimension_numbers = #tpu.dot_dimension_numbers<[1], [1], [0], [0], [0, 0, 1, 0], [], []>} : vector<16x32xbf16>, vector<16x32xbf16>, vector<16x16xf32> -> vector<16x16xf32>
      %cst_113 = arith.constant 1.000000e-03 : f32
      %186 = vector.broadcast %cst_113 : f32 to vector<16x16xf32>
      %187 = arith.mulf %186, %185 : vector<16x16xf32>
      %cst_114 = arith.constant dense<0xFF800000> : vector<16xf32>
      %188 = vector.multi_reduction <maximumf>, %187, %cst_114 [1] : vector<16x16xf32> to vector<16xf32>
      %189 = vector.shape_cast %188 : vector<16xf32> to vector<16x1xf32>
      %190 = vector.broadcast %189 : vector<16x1xf32> to vector<16x16xf32>
      %191 = arith.subf %187, %190 : vector<16x16xf32>
      %192 = math.exp %191 : vector<16x16xf32>
      %cst_115 = arith.constant dense<0.000000e+00> : vector<16xf32>
      %193 = vector.multi_reduction <add>, %192, %cst_115 [1] : vector<16x16xf32> to vector<16xf32>
      %194 = vector.shape_cast %193 : vector<16xf32> to vector<16x1xf32>
      %195 = arith.truncf %192 : vector<16x16xf32> to vector<16x16xbf16>
      %cst_116 = arith.constant dense<0.000000e+00> : vector<16x32xf32>
      %196 = tpu.matmul %195, %184, %cst_116 {dimension_numbers = #tpu.dot_dimension_numbers<[1], [0], [0], [1], [0, 0, 1, 1], [], []>} : vector<16x16xbf16>, vector<16x32xbf16>, vector<16x32xf32> -> vector<16x32xf32>
      %197 = tpu.reciprocal %194 {approx = true} : vector<16x1xf32> -> vector<16x1xf32>
      %198 = vector.broadcast %197 : vector<16x1xf32> to vector<16x32xf32>
      %199 = arith.mulf %196, %198 : vector<16x32xf32>
      %200 = vector.broadcast %0 : f32 to vector<16x32xf32>
      %201 = arith.mulf %200, %172 : vector<16x32xf32>
      %202 = arith.addf %201, %183 : vector<16x32xf32>
      %203 = vector.broadcast %1 : f32 to vector<16x32xf32>
      %204 = arith.mulf %203, %199 : vector<16x32xf32>
      %205 = arith.addf %202, %204 : vector<16x32xf32>
      %c2_117 = arith.constant 2 : index
      %c0_118 = arith.constant 0 : index
      %c0_119 = arith.constant 0 : index
      %206 = vector.load %arg8[%c2_117, %c0_118, %c0_119] : memref<3x16x32xf32, #tpu.memory_space<vmem>>, vector<1x16x32xf32>
      %207 = vector.shape_cast %206 : vector<1x16x32xf32> to vector<16x32xf32>
      %208 = vector.shape_cast %205 : vector<16x32xf32> to vector<1x16x32xf32>
      tpu.vector_store %arg8[%c2_117, %c0_118, %c0_119], %208 {strides = array<i32>} : memref<3x16x32xf32, #tpu.memory_space<vmem>>, vector<1x16x32xf32>,
    }
    return
  }
}

</mosaic_0001>

<bundles_post_ra>
// kernel: glom_forward.1
= control target key start
LH: loop header
LB: loop body
LE: loop exit
PB: predicated region body
PF: predicated region fallthrough
CT: control target
= control target key end

     0   :  { %13 = vsyncpa [#allocation4], 0  ;;  %s1633_s0 = inlined_call_operand.vmem [shape: f32[2], index: 0, kind: input, shape index: {}]   ;;  %s1634_s1 = inlined_call_operand.vmem [shape: bf16[16,64], index: 1, kind: input, shape index: {}]   ;;  %s1635_s2 = inlined_call_operand.vmem [shape: bf16[64,32], index: 2, kind: input, shape index: {}]   ;;  %s1636_s3 = inlined_call_operand.vmem [shape: f32[1,32], index: 3, kind: input, shape index: {}]   ;;  %s1637_s4 = inlined_call_operand.vmem [shape: bf16[3,64,32], index: 4, kind: input, shape index: {}]   ;;  %s1638_s5 = inlined_call_operand.vmem [shape: f32[3,16,32], index: 5, kind: input, shape index: {}]   ;;  %s1639_s6 = inlined_call_operand.vmem [shape: f32[3,1,32], index: 6, kind: input, shape index: {}]   ;;  %s1640_s7 = inlined_call_operand.vmem [shape: f32[3,1,32], index: 7, kind: input, shape index: {}]   ;;  %s1641_s8 = inlined_call_operand.vmem [shape: f32[3,16,32], index: 8, kind: output, shape index: {}]  }
   0x1   :  { %s20_s29 = sshll.u32 %s1633_s0, 4  ;;  %s21_s29 = int_to_ptr.vmem [resolvable:$true] %s20_s29 }
   0x2   :  { %s1185_s30 = scalar_lea.vmem %s21_s29, 16  ;;  %p1190_p1 = scmp.lt.s32.totalorder %s21_s29, %s21_s29 }
   0x3   :  { %p1186_p0 = scmp.ne.s32.totalorder %s21_s29, %s1185_s30  ;;  %p1191_p2 = scmp.lt.s32.totalorder %s1185_s30, %s1185_s30 }
   0x5   :  { %p1192_p3 = por %p1191_p2, %p1190_p1 }
   0x7   :  { %p1193_p4 = pnand %p1192_p3, %p1186_p0 }
   0x9   :  { %1196 = shalt.err (!%p1193_p4)
}
   0xa   :  { %s1207_s9 = smov [#allocation3]  }
   0xb   :  { %23 = dma.vmem_to_smem %s21_s29, 16, %s1207_s9, [#allocation4]  }
   0xc   :  { %1201 = dma.done.wait [#allocation4], 16  }
   0xd   :  { %1202 = vsyncadd [#allocation4], 4294967280 }
   0xe   :  { %41 = sfence }
   0xf   :  { %s1261_s10 = sld [smem:[#allocation3]]  ;;  %s1263_s11 = sld [smem:[#allocation3 + $0x1]]  ;;  %v1138_v0 = vld [vmem:[%s1635_s2] sm:$0xff]   ;;  %v1208_v1 = vmov 0.0   ;;  %v1139_v2 = vld [vmem:[%s1635_s2 + $0x8] sm:$0xff]   ;;  %vm1209_vm0 = vmmov 0  }
  0x10   :  { %1040 = vmatprep.subr.bf16.mxu0 %v1208_v1  ;;  %1048 = vmatprep.mubr.msk.bf16.mxu0 %vm1209_vm0, %v1208_v1  ;;  %v1140_v3 = vld [vmem:[%s1635_s2 + $0x10] sm:$0xff]   ;;  %v1141_v4 = vld [vmem:[%s1635_s2 + $0x18] sm:$0xff]   ;;  %v1142_v5 = vld [vmem:[%s1634_s1] sm:$0xff]   ;;  %vm91_vm1 = vcmask 523264   ;;  %vm136_vm2 = vcmask 261120   ;;  %s1308_s13 = smov 0  }
  0x11   :  { %1041 = vmatpush3.bf16.msra.mxu0 %v1138_v0  ;;  %951 = vst.msk [vmem:[%s1641_s8 + $0x10] sm:$0xff] %vm136_vm2, %v1208_v1  ;;  %952 = vst.msk [vmem:[%s1641_s8 + $0x18] sm:$0xff] %vm136_vm2, %v1208_v1  ;;  %v944_v6 = vld [vmem:[%s1636_s3] ss:$0 sm:$0xff] }
  0x12   :  { %1042 = vmatprep.subr.bf16.mxu0 %v1208_v1  ;;  %953 = vst.msk [vmem:[%s1641_s8 + $0x20] sm:$0xff] %vm136_vm2, %v1208_v1  ;;  %954 = vst.msk [vmem:[%s1641_s8 + $0x28] sm:$0xff] %vm136_vm2, %v1208_v1 }
  0x15   :  { %1043 = vmatpush3.bf16.msra.mxu0 %v1139_v2 }
  0x16   :  { %1044 = vmatprep.subr.bf16.mxu0 %v1208_v1 }
  0x19   :  { %1045 = vmatpush3.bf16.msra.mxu0 %v1140_v3 }
  0x1a   :  { %1046 = vmatprep.subr.bf16.mxu0 %v1208_v1 }
  0x1d   :  { %1047 = vmatpush3.bf16.msra.mxu0 %v1141_v4 }
  0x20   :  { %1049 = vmatmul.mubr.msk.bf16.vlgmr.msra.gmra.mrb[0].mxu0 %vm91_vm1, %v1142_v5 }
  0xf3   :  { %v129_v7 = vpop.f32.mrb[0].mxu0 }
  0xf4   :  { %v130_v8 = vadd.f32 %v944_v6, %v129_v7  ;;  %v1050_v9 = vpop.f32.mrb[1].mxu0 }
  0xf5   :  { %v132_v10 = vpop.f32.mrb[2].mxu0 }
  0xf6   :  { %137 = vst.msk [vmem:[%s1641_s8] sm:$0xff] %vm136_vm2, %v130_v8  ;;  %v133_v11 = vadd.f32 %v944_v6, %v132_v10  ;;  %v1051_v12 = vpop.f32.mrb[3].mxu0 }
  0xf8   :  { %138 = vst.msk [vmem:[%s1641_s8 + $0x8] sm:$0xff] %vm136_vm2, %v133_v11 }
  0xf9 LB: > { %v1210_v15 = vmov 0.0   ;;  %vm1211_vm3 = vmmov 0   ;;  %v185_v41 = vlaneseq  ;;  %v183_v43 = vld [vmem:[%s1639_s6] sm:$0x1]  ;;  %vm337_vm4 = vcmask 130048   ;;  %v1370_v3 = vld [vmem:[%s1641_s8 + $0x10] sm:$0xff]  ;;  %s1205_s13 = sphi %s1308_s13, %s150_s13  }
  0xfa   : > { %1064 = vmatprep.subr.bf16.mxu1 %v1210_v15  ;;  %1066 = vmatprep.mubr.msk.bf16.mxu1 %vm1211_vm3, %v1210_v15  ;;  %v191_v47 = vld [vmem:[%s1640_s7] sm:$0x1]  ;;  %v1375_v4 = vld [vmem:[%s1641_s8 + $0x18] sm:$0xff]  ;;  %v1144_v6 = vld [vmem:[%s1637_s4 + $0x8] sm:$0xff]   ;;  %s1212_s12 = smov 32   ;;  %v417_v12 = vsel %vm136_vm2, %v1370_v3, 0.0 }
  0xfb   : > { %1052 = vmatprep.subr.bf16.mxu0 %v1210_v15  ;;  %1060 = vmatprep.mubr.msk.bf16.mxu0 %vm1211_vm3, %v1210_v15  ;;  %v186_v42 = vshrl.u32 %v185_v41, 7  ;;  %v1143_v2 = vld [vmem:[%s1637_s4] sm:$0xff]   ;;  %v204_v5 = vpack.c.bf16 %v1375_v4, %v1370_v3  ;;  %v1391_v8 = vld [vmem:[%s1641_s8 + $0x28] sm:$0xff]  ;;  %v1145_v10 = vld [vmem:[%s1637_s4 + $0x10] sm:$0xff]   ;;  %vm209_vm5 = vcmask 523520   ;;  %s150_s13 = sadd.s32 1, %s1205_s13  }
  0xfc   : > { %1053 = vmatpush3.bf16.msra.mxu0 %v1143_v2  ;;  %v1386_v7 = vld [vmem:[%s1641_s8 + $0x20] sm:$0xff]  ;;  %v1146_v11 = vld [vmem:[%s1637_s4 + $0x18] sm:$0xff]   ;;  %p147_p5 = scmp.ge.s32.totalorder %s150_s13, 2  }
  0xfd   : > { %v151_v13 = vld [vmem:[%s1641_s8] sm:$0xff]  ;;  %v1332_v44 = vsub.s32 0, %v186_v42  ;;  %1054 = vmatprep.subr.bf16.mxu0 %v1210_v15  ;;  %v1395_v9 = vpack.c.bf16 %v1391_v8, %v1386_v7 }
  0xfe   : > { %v157_v16 = vsel %vm136_vm2, %v151_v13, 0.0  ;;  %v166_v18 = vmul.f32 %v151_v13, %v151_v13 }
  0xff   : > { %v152_v14 = vld [vmem:[%s1641_s8 + $0x8] sm:$0xff]  ;;  %203 = vst.msk [vmem:[#allocation2] sm:$0xff] %vm136_vm2, %v1395_v9 }
 0x100   : > { %v158_v17 = vsel %vm136_vm2, %v152_v14, 0.0  ;;  %v167_v19 = vmul.f32 %v152_v14, %v152_v14  ;;  %v168_v21 = vsel %vm136_vm2, %v166_v18, 0.0  ;;  %1055 = vmatpush3.bf16.msra.mxu0 %v1144_v6  ;;  %v1468_v6 = vstv %s1261_s10 }
 0x101   : > { %v159_v20 = vadd.f32 %v158_v17, %v157_v16  ;;  %1056 = vmatprep.subr.bf16.mxu0 %v1210_v15  ;;  %v427_v16 = vmul.f32 %v1375_v4, %v1375_v4 }
 0x102   : > { %v169_v22 = vsel %vm136_vm2, %v167_v19, 0.0 }
 0x103   : > { %v160_v23 = vrot.slane %v159_v20, 4  ;;  %v170_v24 = vadd.f32 %v169_v22, %v168_v21  ;;  %v429_v19 = vsel %vm136_vm2, %v427_v16, 0.0 }
 0x104   : > { %1057 = vmatpush3.bf16.msra.mxu0 %v1145_v10 }
 0x105   : > { %v161_v25 = vadd.f32 %v160_v23, %v159_v20  ;;  %v171_v26 = vrot.slane %v170_v24, 4  ;;  %1058 = vmatprep.subr.bf16.mxu0 %v1210_v15 }
 0x107   : > { %v162_v27 = vrot.slane %v161_v25, 2  ;;  %v172_v28 = vadd.f32 %v171_v26, %v170_v24 }
 0x108   : > { %1059 = vmatpush3.bf16.msra.mxu0 %v1146_v11  ;;  %v221_v11 = vld [vmem:[%s1638_s5 + $0x8] sm:$0xff] }
 0x109   : > { %v163_v29 = vadd.f32 %v162_v27, %v161_v25  ;;  %v173_v30 = vrot.slane %v172_v28, 2  ;;  %1076 = vmatprep.subr.bf16.mxu0 %v1210_v15 }
 0x10b   : > { %v164_v31 = vrot.slane %v163_v29, 1  ;;  %v174_v32 = vadd.f32 %v173_v30, %v172_v28 }
 0x10d   : > { %v165_v33 = vadd.f32 %v164_v31, %v163_v29  ;;  %v175_v34 = vrot.slane %v174_v32, 1 }
 0x10f   : > { %v176_v35 = vadd.f32 %v175_v34, %v174_v32  ;;  %v177_v36 = vmul.f32 0.0625, %v165_v33 }
 0x111   : > { %v178_v37 = vmul.f32 0.0625, %v176_v35  ;;  %v179_v38 = vmul.f32 %v177_v36, %v177_v36 }
 0x113   : > { %v180_v39 = vsub.f32 %v178_v37, %v179_v38 }
 0x115   : > { %v181_v40 = vadd.f32 1e-05, %v180_v39  ;;  %v966_v39 = vld [vmem:[%s1639_s6 + $0x1] sm:$0x1] }
 0x117   : > { %1155 = vrsqrt.f32 %v181_v40 }
 0x121   : > { %v1156_v45 = vpop.eup %1155 }
 0x122   : > { %v184_v46 = vmul.f32 %v1156_v45, %v183_v43  ;;  %v967_v45 = vld [vmem:[%s1640_s7 + $0x1] sm:$0x1] }
 0x124   : > { %v188_v48 = vrot.slane %v184_v46, %v1332_v44  ;;  %v192_v49 = vmul.f32 %v184_v46, %v177_v36 }
 0x126   : > { %v189_v50 = vmul.f32 %v188_v48, %v151_v13  ;;  %v190_v51 = vmul.f32 %v188_v48, %v152_v14  ;;  %v193_v52 = vsub.f32 %v191_v47, %v192_v49  ;;  %v418_v13 = vsel %vm136_vm2, %v1375_v4, 0.0 }
 0x127   : > { %v426_v14 = vmul.f32 %v1370_v3, %v1370_v3  ;;  %v419_v17 = vadd.f32 %v418_v13, %v417_v12 }
 0x128   : > { %v198_v53 = vrot.slane %v193_v52, %v1332_v44 }
 0x129   : > { %v428_v18 = vsel %vm136_vm2, %v426_v14, 0.0  ;;  %v420_v20 = vrot.slane %v419_v17, 4 }
 0x12a   : > { %v1339_v54 = vadd.f32 %v198_v53, %v189_v50  ;;  %v1341_v55 = vadd.f32 %v198_v53, %v190_v51  ;;  %v430_v21 = vadd.f32 %v429_v19, %v428_v18 }
 0x12b   : > { %v421_v22 = vadd.f32 %v420_v20, %v419_v17 }
 0x12c   : > { %v1345_v56 = vpack.c.bf16 %v1341_v55, %v1339_v54  ;;  %v431_v23 = vrot.slane %v430_v21, 4  ;;  %v407_v16 = vmul.f32 %v1468_v6, %v1341_v55 }
 0x12d   : > { %v422_v24 = vrot.slane %v421_v22, 2 }
 0x12e   : > { %v292_v57 = vsel %vm136_vm2, %v1345_v56, 0  ;;  %v432_v25 = vadd.f32 %v431_v23, %v430_v21  ;;  %v1478_v21 = vstv %s1263_s11 }
 0x12f   : > { %1065 = vmatpush3.bf16.xpose.msra.mxu1 %v292_v57  ;;  %v423_v26 = vadd.f32 %v422_v24, %v421_v22 }
 0x130   : > { %1070 = vmatprep.subr.bf16.mxu1 %v1210_v15  ;;  %v433_v27 = vrot.slane %v432_v25, 2 }
 0x131   : > { %v424_v28 = vrot.slane %v423_v26, 1 }
 0x132   : > { %v434_v29 = vadd.f32 %v433_v27, %v432_v25 }
 0x133   : > { %v425_v31 = vadd.f32 %v424_v28, %v423_v26 }
 0x134   : > { %v435_v30 = vrot.slane %v434_v29, 1 }
 0x135   : > { %v437_v33 = vmul.f32 0.0625, %v425_v31 }
 0x136   : > { %1067 = vmatmul.mubr.msk.bf16.vlgmr.msra.gmra.mrb[0].mxu1 %vm136_vm2, %v1345_v56  ;;  %v436_v32 = vadd.f32 %v435_v30, %v434_v29 }
 0x137   : > { %1071 = vmatpush3.bf16.msra.mxu1 %v1345_v56  ;;  %1072 = vmatprep.mubr.msk.bf16.mxu1 %vm1211_vm3, %v1210_v15  ;;  %v439_v35 = vmul.f32 %v437_v33, %v437_v33 }
 0x138   : > { %1088 = vmatprep.subr.bf16.mxu1 %v1210_v15  ;;  %v438_v34 = vmul.f32 0.0625, %v436_v32 }
 0x13a   : > { %v440_v36 = vsub.f32 %v438_v34, %v439_v35  ;;  %v675_v34 = vsel %vm136_vm2, %v1386_v7, 0.0  ;;  %v676_v35 = vsel %vm136_vm2, %v1391_v8, 0.0 }
 0x13c   : > { %v441_v37 = vadd.f32 1e-05, %v440_v36  ;;  %v684_v36 = vmul.f32 %v1386_v7, %v1386_v7 }
 0x13e   : > { %1157 = vrsqrt.f32 %v441_v37  ;;  %v685_v37 = vmul.f32 %v1391_v8, %v1391_v8 }
 0x148   : > { %v1158_v38 = vpop.eup %1157 }
 0x149   : > { %v445_v40 = vmul.f32 %v1158_v38, %v966_v39  ;;  %v677_v38 = vadd.f32 %v676_v35, %v675_v34  ;;  %v686_v39 = vsel %vm136_vm2, %v684_v36, 0.0 }
 0x14b   : > { %v454_v42 = vmul.f32 %v445_v40, %v437_v33  ;;  %v449_v48 = vrot.slane %v445_v40, %v1332_v44  ;;  %v687_v40 = vsel %vm136_vm2, %v685_v37, 0.0 }
 0x14d   : > { %v455_v49 = vsub.f32 %v967_v45, %v454_v42  ;;  %v450_v53 = vmul.f32 %v1370_v3, %v449_v48  ;;  %v451_v57 = vmul.f32 %v1375_v4, %v449_v48  ;;  %v688_v42 = vadd.f32 %v687_v40, %v686_v39 }
 0x14f   : > { %v689_v45 = vrot.slane %v688_v42, 4 }
 0x209   : > { %v328_v58 = vpop.f32.mrb[0].mxu1 }
 0x20a   : > { %v1356_v59 = vmul.f32 0.001, %v328_v58  ;;  %v1068_v60 = vpop.f32.mrb[1].mxu1  ;;  %v460_v58 = vrot.slane %v455_v49, %v1332_v44 }
 0x20b   : > { %v331_v61 = vpop.f32.mrb[2].mxu1 }
 0x20c   : > { %v1358_v62 = vmul.f32 0.001, %v331_v61  ;;  %v1069_v63 = vpop.f32.mrb[3].mxu1  ;;  %v338_v0 = vsel %vm337_vm4, %v1356_v59, -inf  ;;  %v1436_v60 = vadd.f32 %v460_v58, %v451_v57 }
 0x20d   : > { %339 = vmax.xlane.f32.xlu0 %v338_v0 }
 0x20e   : > { %v341_v1 = vsel %vm337_vm4, %v1358_v62, -inf }
 0x211   : > { %342 = vmax.xlane.f32.xlu0 %v341_v1 }
 0x227   : > { %206 = vrot.lane.b32.xlu0 %v204_v5, %s1212_s12 }
 0x22b   : > { %724 = vrot.lane.b32.xlu0 %v1345_v56, %s1212_s12 }
 0x29a   : > { %v340_v41 = vpop.xlane.xlu0 %339 }
 0x29b   : > { %v344_v43 = vsub.f32 %v1356_v59, %v340_v41  ;;  %v1434_v59 = vadd.f32 %v460_v58, %v450_v53  ;;  %v678_v41 = vrot.slane %v677_v38, 4 }
 0x29d   : > { %v346_v46 = vmul.f32 1.442695, %v344_v43  ;;  %v679_v43 = vadd.f32 %v678_v41, %v677_v38 }
 0x29e   : > { %v343_v47 = vpop.xlane.xlu0 %342 }
 0x29f   : > { %v345_v50 = vsub.f32 %v1358_v62, %v343_v47  ;;  %1159 = vpow2.f32 %v346_v46  ;;  %v1440_v62 = vpack.c.bf16 %v1436_v60, %v1434_v59  ;;  %v690_v46 = vadd.f32 %v689_v45, %v688_v42  ;;  %v1147_v45 = vld [vmem:[%s1637_s4 + $0x20] sm:$0xff]  }
 0x2a0   : > { %v680_v47 = vrot.slane %v679_v43, 2 }
 0x2a1   : > { %v348_v51 = vmul.f32 1.442695, %v345_v50  ;;  %v553_v3 = vsel %vm136_vm2, %v1440_v62, 0  ;;  %v691_v48 = vrot.slane %v690_v46, 2 }
 0x2a2   : > { %v207_v52 = vpop.permute.xlu0 %206  ;;  %v681_v49 = vadd.f32 %v680_v47, %v679_v43  ;;  %v1149_v47 = vld [vmem:[%s1637_s4 + $0x30] sm:$0xff]  }
 0x2a3   : > { %1161 = vpow2.f32 %v348_v51  ;;  %210 = vst.msk [vmem:[#allocation2] sm:$0xff] %vm209_vm5, %v207_v52  ;;  %v692_v50 = vadd.f32 %v691_v48, %v690_v46  ;;  %v1148_v46 = vld [vmem:[%s1637_s4 + $0x28] sm:$0xff]   ;;  %v1150_v48 = vld [vmem:[%s1637_s4 + $0x38] sm:$0xff]  }
 0x2a4   : > { %v682_v51 = vrot.slane %v681_v49, 1 }
 0x2a5   : > { %v693_v52 = vrot.slane %v692_v50, 1 }
 0x2a6   : > { %v683_v53 = vadd.f32 %v682_v51, %v681_v49 }
 0x2a7   : > { %v694_v57 = vadd.f32 %v693_v52, %v692_v50 }
 0x2a8   : > { %v695_v58 = vmul.f32 0.0625, %v683_v53 }
 0x2a9   : > { %v1445_v63 = vpop.eup %1159 }
 0x2aa   : > { %v211_v61 = vld [vmem:[#allocation2] sm:$0xff]  ;;  %v350_v49 = vsel %vm337_vm4, %v1445_v63, 0.0 }
 0x2ab   : > { %1061 = vmatmul.mubr.msk.bf16.vlgmr.msra.gmra.mrb[0].mxu0 %vm91_vm1, %v211_v61  ;;  %464 = vst.msk [vmem:[#allocation2] sm:$0xff] %vm136_vm2, %v1345_v56  ;;  %v1463_v56 = vpop.permute.xlu0 %724  ;;  %v696_v61 = vmul.f32 0.0625, %v694_v57 }
 0x2ac   : > { %1084 = vmatprep.mubr.msk.bf16.mxu0 %vm1211_vm3, %v1210_v15  ;;  %1077 = vmatpush3.bf16.msra.mxu0 %v1147_v45 }
 0x2ad   : > { %v1162_v0 = vpop.eup %1161  ;;  %1078 = vmatprep.subr.bf16.mxu0 %v1210_v15 }
 0x2ae   : > { %v353_v1 = vsel %vm337_vm4, %v1162_v0, 0.0  ;;  %v356_v2 = vpack.c.bf16 %v1162_v0, %v1445_v63  ;;  %v697_v0 = vmul.f32 %v695_v58, %v695_v58 }
 0x2af   : > { %354 = vadd.xlane.f32.xlu0 %v353_v1 }
 0x2b0   : > { %1073 = vmatmul.mubr.msk.bf16.vlgmr.msra.gmra.mrb[4].mxu1 %vm337_vm4, %v356_v2  ;;  %v698_v1 = vsub.f32 %v696_v61, %v697_v0  ;;  %1079 = vmatpush3.bf16.msra.mxu0 %v1148_v46  ;;  %v1151_v61 = vld [vmem:[%s1637_s4 + $0x40] sm:$0xff]  }
 0x2b1   : > { %1089 = vmatpush3.bf16.xpose.msra.mxu1 %v553_v3  ;;  %1090 = vmatprep.mubr.msk.bf16.mxu1 %vm1211_vm3, %v1210_v15  ;;  %v997_v46 = vld [vmem:[%s1638_s5 + $0x20] sm:$0xff] }
 0x2b2   : > { %1094 = vmatprep.subr.bf16.mxu1 %v1210_v15  ;;  %v699_v2 = vadd.f32 1e-05, %v698_v1  ;;  %1080 = vmatprep.subr.bf16.mxu0 %v1210_v15 }
 0x2b4   : > { %1081 = vmatpush3.bf16.msra.mxu0 %v1149_v47 }
 0x2b5   : > { %1082 = vmatprep.subr.bf16.mxu0 %v1210_v15 }
 0x2b8   : > { %1091 = vmatmul.mubr.msk.bf16.vlgmr.msra.gmra.mrb[8].mxu1 %vm136_vm2, %v1440_v62  ;;  %1083 = vmatpush3.bf16.msra.mxu0 %v1150_v48 }
 0x2b9   : > { %1095 = vmatpush3.bf16.msra.mxu1 %v1440_v62  ;;  %1096 = vmatprep.mubr.msk.bf16.mxu1 %vm1211_vm3, %v1210_v15 }
 0x2ba   : > { %1112 = vmatprep.subr.bf16.mxu1 %v1210_v15  ;;  %1100 = vmatprep.subr.bf16.mxu0 %v1210_v15 }
 0x33c   : > { %v355_v4 = vpop.xlane.xlu0 %354 }
 0x33d   : > { %1163 = vrcp.f32 %v355_v4  ;;  %v987_v4 = vld [vmem:[%s1639_s6 + $0x2] sm:$0x1] }
 0x33e   : > { %1165 = vrsqrt.f32 %v699_v2  ;;  %v1152_v2 = vld [vmem:[%s1637_s4 + $0x48] sm:$0xff]  }
 0x347   : > { %v1164_v19 = vpop.eup %1163 }
 0x348   : > { %v1166_v3 = vpop.eup %1165 }
 0x37e   : > { %v1465_v5 = vpop.f32.mrb[0].mxu0 }
 0x37f   : > { %v1062_v10 = vpop.f32.mrb[1].mxu0 }
 0x380   : > { %v286_v12 = vpop.f32.mrb[2].mxu0  ;;  %v703_v10 = vmul.f32 %v1166_v3, %v987_v4 }
 0x381   : > { %v1063_v13 = vpop.f32.mrb[3].mxu0  ;;  %v287_v14 = vadd.f32 %v286_v12, %v221_v11 }
 0x382   : > { %v712_v12 = vmul.f32 %v703_v10, %v695_v58 }
 0x383   : > { %v1475_v17 = vpop.f32.mrb[4].mxu1  ;;  %v409_v22 = vadd.f32 %v407_v16, %v287_v14  ;;  %v988_v14 = vld [vmem:[%s1640_s7 + $0x2] sm:$0x1] }
 0x384   : > { %v1074_v18 = vpop.f32.mrb[5].mxu1 }
 0x385   : > { %v397_v20 = vpop.f32.mrb[6].mxu1 }
 0x386   : > { %v404_v23 = vmul.f32 %v1164_v19, %v397_v20  ;;  %v1075_v24 = vpop.f32.mrb[7].mxu1  ;;  %v707_v19 = vrot.slane %v703_v10, %v1332_v44  ;;  %v713_v20 = vsub.f32 %v988_v14, %v712_v12 }
 0x388   : > { %v412_v25 = vmul.f32 %v1478_v21, %v404_v23  ;;  %v708_v24 = vmul.f32 %v1386_v7, %v707_v19 }
 0x38a   : > { %v414_v26 = vadd.f32 %v412_v25, %v409_v22  ;;  %v709_v25 = vmul.f32 %v1391_v8, %v707_v19 }
 0x38b   : > { %v589_v27 = vpop.f32.mrb[8].mxu1 }
 0x38c   : > { %416 = vst.msk [vmem:[%s1641_s8 + $0x8] sm:$0xff] %vm136_vm2, %v414_v26  ;;  %v596_v55 = vmul.f32 0.001, %v589_v27  ;;  %v1092_v28 = vpop.f32.mrb[9].mxu1  ;;  %v718_v26 = vrot.slane %v713_v20, %v1332_v44 }
 0x38d   : > { %v592_v29 = vpop.f32.mrb[10].mxu1 }
 0x38e   : > { %v597_v30 = vmul.f32 0.001, %v592_v29  ;;  %v1093_v31 = vpop.f32.mrb[11].mxu1  ;;  %v598_v32 = vsel %vm337_vm4, %v596_v55, -inf  ;;  %v1507_v27 = vadd.f32 %v718_v26, %v708_v24 }
 0x38f   : > { %599 = vmax.xlane.f32.xlu1 %v598_v32 }
 0x390   : > { %v601_v33 = vsel %vm337_vm4, %v597_v30, -inf  ;;  %v923_v48 = vmul.f32 %v1507_v27, %v1468_v6 }
 0x393   : > { %602 = vmax.xlane.f32.xlu1 %v601_v33 }
 0x41c   : > { %v600_v11 = vpop.xlane.xlu1 %599 }
 0x41d   : > { %v604_v13 = vsub.f32 %v596_v55, %v600_v11  ;;  %v1509_v55 = vadd.f32 %v718_v26, %v709_v25 }
 0x41f   : > { %v606_v16 = vmul.f32 1.442695, %v604_v13  ;;  %v809_v31 = vpack.c.bf16 %v1509_v55, %v1507_v27  ;;  %v220_v13 = vld [vmem:[%s1638_s5] sm:$0xff] }
 0x420   : > { %v603_v18 = vpop.xlane.xlu1 %602  ;;  %v284_v14 = vadd.f32 %v1465_v5, %v220_v13 }
 0x421   : > { %1167 = vpow2.f32 %v606_v16  ;;  %v605_v22 = vsub.f32 %v597_v30, %v603_v18  ;;  %v811_v8 = vsel %vm136_vm2, %v809_v31, 0  ;;  %v406_v16 = vmul.f32 %v1468_v6, %v1339_v54  ;;  %v976_v54 = vld [vmem:[%s1638_s5 + $0x10] sm:$0xff] }
 0x423   : > { %v608_v23 = vmul.f32 1.442695, %v605_v22  ;;  %v408_v19 = vadd.f32 %v406_v16, %v284_v14 }
 0x425   : > { %1169 = vpow2.f32 %v608_v23 }
 0x42b   : > { %v1168_v28 = vpop.eup %1167 }
 0x42c   : > { %v610_v29 = vsel %vm337_vm4, %v1168_v28, 0.0 }
 0x42d   : > { %611 = vadd.xlane.f32.xlu0 %v610_v29  ;;  %v977_v29 = vld [vmem:[%s1638_s5 + $0x18] sm:$0xff] }
 0x42f   : > { %v1170_v30 = vpop.eup %1169 }
 0x430   : > { %v613_v32 = vsel %vm337_vm4, %v1170_v30, 0.0  ;;  %v616_v7 = vpack.c.bf16 %v1170_v30, %v1168_v28 }
 0x431   : > { %614 = vadd.xlane.f32.xlu0 %v613_v32 }
 0x432   : > { %1097 = vmatmul.mubr.msk.bf16.vlgmr.msra.gmra.mrb[12].mxu1 %vm337_vm4, %v616_v7 }
 0x433   : > { %1113 = vmatpush3.bf16.xpose.msra.mxu1 %v811_v8  ;;  %1114 = vmatprep.mubr.msk.bf16.mxu1 %vm1211_vm3, %v1210_v15  ;;  %v666_v8 = vmul.f32 %v1436_v60, %v1468_v6 }
 0x434   : > { %1118 = vmatprep.subr.bf16.mxu1 %v1210_v15 }
 0x43a   : > { %1115 = vmatmul.mubr.msk.bf16.vlgmr.msra.gmra.mrb[16].mxu1 %vm136_vm2, %v809_v31 }
 0x43b   : > { %1119 = vmatpush3.bf16.msra.mxu1 %v809_v31  ;;  %1120 = vmatprep.mubr.msk.bf16.mxu1 %vm1211_vm3, %v1210_v15 }
 0x4ba   : > { %v612_v23 = vpop.xlane.xlu0 %611 }
 0x4be   : > { %v615_v24 = vpop.xlane.xlu0 %614 }
 0x505   : > { %v1523_v44 = vpop.f32.mrb[12].mxu1 }
 0x506   : > { %v1098_v33 = vpop.f32.mrb[13].mxu1 }
 0x507   : > { %v1525_v34 = vpop.f32.mrb[14].mxu1 }
 0x508   : > { %v1099_v35 = vpop.f32.mrb[15].mxu1 }
 0x50d   : > { %v847_v36 = vpop.f32.mrb[16].mxu1 }
 0x50e   : > { %v854_v37 = vmul.f32 0.001, %v847_v36  ;;  %v1116_v38 = vpop.f32.mrb[17].mxu1 }
 0x50f   : > { %v850_v39 = vpop.f32.mrb[18].mxu1 }
 0x510   : > { %v855_v40 = vmul.f32 0.001, %v850_v39  ;;  %v1117_v41 = vpop.f32.mrb[19].mxu1  ;;  %v856_v42 = vsel %vm337_vm4, %v854_v37, -inf }
 0x511   : > { %857 = vmax.xlane.f32.xlu1 %v856_v42 }
 0x512   : > { %v859_v43 = vsel %vm337_vm4, %v855_v40, -inf }
 0x515   : > { %860 = vmax.xlane.f32.xlu1 %v859_v43 }
 0x526   : > { %466 = vrot.lane.b32.xlu1 %v1395_v9, %s1212_s12 }
 0x54a   : > { %351 = vadd.xlane.f32.xlu1 %v350_v49 }
 0x59e   : > { %v858_v50 = vpop.xlane.xlu1 %857 }
 0x59f   : > { %v862_v51 = vsub.f32 %v854_v37, %v858_v50 }
 0x5a1   : > { %v864_v52 = vmul.f32 1.442695, %v862_v51  ;;  %v998_v51 = vld [vmem:[%s1638_s5 + $0x28] sm:$0xff] }
 0x5a2   : > { %v861_v53 = vpop.xlane.xlu1 %860 }
 0x5a3   : > { %1171 = vpow2.f32 %v864_v52  ;;  %v863_v9 = vsub.f32 %v855_v40, %v861_v53 }
 0x5a5   : > { %v866_v57 = vmul.f32 1.442695, %v863_v9 }
 0x5a6   : > { %v467_v58 = vpop.permute.xlu1 %466 }
 0x5a7   : > { %1173 = vpow2.f32 %v866_v57  ;;  %469 = vst.msk [vmem:[#allocation2] sm:$0xff] %vm209_vm5, %v467_v58  ;;  %v924_v57 = vmul.f32 %v1509_v55, %v1468_v6 }
 0x5ad   : > { %v1172_v0 = vpop.eup %1171 }
 0x5ae   : > { %v868_v1 = vsel %vm337_vm4, %v1172_v0, 0.0  ;;  %v470_v63 = vld [vmem:[#allocation2] sm:$0xff] }
 0x5af   : > { %869 = vadd.xlane.f32.xlu1 %v868_v1  ;;  %1085 = vmatmul.mubr.msk.bf16.vlgmr.msra.gmra.mrb[4].mxu0 %vm91_vm1, %v470_v63  ;;  %722 = vst.msk [vmem:[#allocation2] sm:$0xff] %vm136_vm2, %v1440_v62  ;;  %v1153_v62 = vld [vmem:[%s1637_s4 + $0x50] sm:$0xff]  }
 0x5b0   : > { %727 = vst.msk [vmem:[#allocation2] sm:$0xff] %vm209_vm5, %v1463_v56  ;;  %1101 = vmatpush3.bf16.msra.mxu0 %v1151_v61  ;;  %1108 = vmatprep.mubr.msk.bf16.mxu0 %vm1211_vm3, %v1210_v15  ;;  %v1154_v56 = vld [vmem:[%s1637_s4 + $0x58] sm:$0xff]  }
 0x5b1   : > { %v1174_v3 = vpop.eup %1173  ;;  %1102 = vmatprep.subr.bf16.mxu0 %v1210_v15 }
 0x5b2   : > { %v871_v4 = vsel %vm337_vm4, %v1174_v3, 0.0  ;;  %v874_v10 = vpack.c.bf16 %v1174_v3, %v1172_v0 }
 0x5b3   : > { %872 = vadd.xlane.f32.xlu0 %v871_v4 }
 0x5b4   : > { %1103 = vmatpush3.bf16.msra.mxu0 %v1152_v2  ;;  %1121 = vmatmul.mubr.msk.bf16.vlgmr.msra.gmra.mrb[20].mxu1 %vm337_vm4, %v874_v10 }
 0x5b5   : > { %1104 = vmatprep.subr.bf16.mxu0 %v1210_v15 }
 0x5b7   : > { %v728_v11 = vld [vmem:[#allocation2] sm:$0xff] }
 0x5b8   : > { %1105 = vmatpush3.bf16.msra.mxu0 %v1153_v62 }
 0x5b9   : > { %1106 = vmatprep.subr.bf16.mxu0 %v1210_v15 }
 0x5bc   : > { %1107 = vmatpush3.bf16.msra.mxu0 %v1154_v56 }
 0x5bf   : > { %1109 = vmatmul.mubr.msk.bf16.vlgmr.msra.gmra.mrb[8].mxu0 %vm91_vm1, %v728_v11 }
 0x5d7   : > { %v352_v12 = vpop.xlane.xlu1 %351 }
 0x5d8   : > { %1175 = vrcp.f32 %v352_v12 }
 0x5d9   : > { %1177 = vrcp.f32 %v612_v23 }
 0x5da   : > { %1179 = vrcp.f32 %v615_v24 }
 0x5e2   : > { %v1176_v18 = vpop.eup %1175 }
 0x5e3   : > { %v403_v20 = vmul.f32 %v1176_v18, %v1475_v17  ;;  %v1178_v5 = vpop.eup %1177  ;;  %v665_v17 = vmul.f32 %v1434_v59, %v1468_v6 }
 0x5e4   : > { %v663_v25 = vmul.f32 %v1178_v5, %v1523_v44  ;;  %v1180_v26 = vpop.eup %1179 }
 0x5e5   : > { %v411_v15 = vmul.f32 %v1478_v21, %v403_v20  ;;  %v664_v31 = vmul.f32 %v1180_v26, %v1525_v34 }
 0x5e6   : > { %v669_v44 = vmul.f32 %v663_v25, %v1478_v21 }
 0x5e7   : > { %v413_v22 = vadd.f32 %v411_v15, %v408_v19  ;;  %v670_v38 = vmul.f32 %v664_v31, %v1478_v21 }
 0x5e9   : > { %415 = vst.msk [vmem:[%s1641_s8] sm:$0xff] %vm136_vm2, %v413_v22 }
 0x63c   : > { %v870_v30 = vpop.xlane.xlu1 %869 }
 0x63d   : > { %1181 = vrcp.f32 %v870_v30 }
 0x640   : > { %v873_v35 = vpop.xlane.xlu0 %872 }
 0x641   : > { %1183 = vrcp.f32 %v873_v35 }
 0x647   : > { %v1182_v45 = vpop.eup %1181 }
 0x64b   : > { %v1184_v49 = vpop.eup %1183 }
 0x682   : > { %v544_v28 = vpop.f32.mrb[4].mxu0 }
 0x683   : > { %v545_v32 = vadd.f32 %v976_v54, %v544_v28  ;;  %v1086_v7 = vpop.f32.mrb[5].mxu0 }
 0x684   : > { %v547_v33 = vpop.f32.mrb[6].mxu0 }
 0x685   : > { %v667_v36 = vadd.f32 %v665_v17, %v545_v32  ;;  %v548_v59 = vadd.f32 %v977_v29, %v547_v33  ;;  %v1087_v37 = vpop.f32.mrb[7].mxu0 }
 0x687   : > { %v671_v39 = vadd.f32 %v669_v44, %v667_v36  ;;  %v668_v40 = vadd.f32 %v666_v8, %v548_v59  ;;  %v912_v41 = vpop.f32.mrb[20].mxu1 }
 0x688   : > { %v1122_v34 = vpop.f32.mrb[21].mxu1  ;;  %v921_v47 = vmul.f32 %v1182_v45, %v912_v41 }
 0x689   : > { %985 = vst.msk [vmem:[%s1641_s8 + $0x10] sm:$0xff] %vm136_vm2, %v671_v39  ;;  %v672_v60 = vadd.f32 %v670_v38, %v668_v40  ;;  %v915_v42 = vpop.f32.mrb[22].mxu1 }
 0x68a   : > { %v1123_v43 = vpop.f32.mrb[23].mxu1  ;;  %v922_v52 = vmul.f32 %v1184_v49, %v915_v42  ;;  %v927_v61 = vmul.f32 %v921_v47, %v1478_v21 }
 0x68b   : > { %986 = vst.msk [vmem:[%s1641_s8 + $0x18] sm:$0xff] %vm136_vm2, %v672_v60 }
 0x68c   : > { %v928_v27 = vmul.f32 %v922_v52, %v1478_v21 }
 0x692   : > { %v802_v50 = vpop.f32.mrb[8].mxu0 }
 0x693   : > { %v803_v53 = vadd.f32 %v997_v46, %v802_v50  ;;  %v1110_v9 = vpop.f32.mrb[9].mxu0 }
 0x694   : > { %v805_v58 = vpop.f32.mrb[10].mxu0 }
 0x695   : > { %v925_v0 = vadd.f32 %v923_v48, %v803_v53  ;;  %v806_v1 = vadd.f32 %v998_v51, %v805_v58  ;;  %v1111_v63 = vpop.f32.mrb[11].mxu0  ;;  %149 = sbr.rel (!%p147_p5) target bundleno = 249 (0xf9), region = 73 }
 0x697   : > { %v929_v2 = vadd.f32 %v927_v61, %v925_v0  ;;  %v926_v3 = vadd.f32 %v924_v57, %v806_v1 }
 0x699   : > { %1006 = vst.msk [vmem:[%s1641_s8 + $0x20] sm:$0xff] %vm136_vm2, %v929_v2  ;;  %v930_v4 = vadd.f32 %v928_v27, %v926_v3 }
 0x69b   : > { %1007 = vst.msk [vmem:[%s1641_s8 + $0x28] sm:$0xff] %vm136_vm2, %v930_v4 }
 0x69c   :  { %937 = vsyncpa [#allocation4], 1 }

</bundles_post_ra>
